<compile_context>
chip_gen: v5e
topology: v5e:2x2
jax: 0.10.0
libtpu: 0.0.40
codegen_flags: <defaults>
</compile_context>

<pallas_src>
import math

import jax
import jax.numpy as jnp
from jax.experimental import pallas as pl
from jax.experimental.pallas import tpu as pltpu


def _round_up(a, m):
    return (a + m - 1) // m * m


def _cdiv(a, b):
    return (a + b - 1) // b


def _gelu_exact(x):
    # torch.nn.functional.gelu default: x * 0.5 * (1 + erf(x / sqrt(2)))
    # NOTE: keep erf form (do NOT switch to tanh-GELU -- changes numerics).
    return x * 0.5 * (1.0 + jax.lax.erf(x / math.sqrt(2.0)))


def lm_head_kernel(x_ref, wd_ref, bd_ref, g_ref, b_ref, emb_ref, lmb_ref,
                   out_ref, h_ref):
    # x_ref:   (TILE_N, H)        rows of sequence_output
    # wd_ref:  (H, H)             dense weight, PyTorch [out, in] layout
    # bd_ref:  (1, H)             dense bias
    # g_ref:   (1, H)             LayerNorm gamma
    # b_ref:   (1, H)             LayerNorm beta
    # emb_ref: (TILE_V, H)        embedding-table tile (tied decoder weight)
    # lmb_ref: (1, TILE_V)        decoder bias tile
    # out_ref: (TILE_N, TILE_V)   logits tile
    # h_ref:   (TILE_N, H)        scratch, decoder-matmul dtype (emb dtype)

    # The transform is row-tile-only work: do it once per row tile (the vocab
    # axis is the inner "arbitrary" grid axis) and reuse for all vocab tiles.
    @pl.when(pl.program_id(1) == 0)
    def _():
        x = x_ref[...]
        # dense: y = x @ W^T + b   (contract last dims of both operands)
        h = jax.lax.dot_general(
            x, wd_ref[...],
            dimension_numbers=(((1,), (1,)), ((), ())),
            preferred_element_type=jnp.float32)
        h = h + bd_ref[...].astype(jnp.float32)
        # activation (config.hidden_act == 'gelu', exact erf form)
        h = _gelu_exact(h)
        # BertLayerNorm, eps=1e-5, biased variance over last dim
        mu = jnp.mean(h, axis=-1, keepdims=True)
        var = jnp.mean((h - mu) * (h - mu), axis=-1, keepdims=True)
        h = (h - mu) * jax.lax.rsqrt(var + 1e-5)
        h = h * g_ref[...].astype(jnp.float32) + b_ref[...].astype(jnp.float32)
        # Single cast to the matmul dtype here; no per-vocab-step cast below.
        h_ref[...] = h.astype(h_ref.dtype)

    # decoder: scores = h @ emb^T + lm_bias   (emb tile kept as [TILE_V, H];
    # transposed-RHS contraction lowers to the MXU without a per-tile XLU
    # transpose -- check with pl.lower_as_mlir if retargeting).
    scores = jax.lax.dot_general(
        h_ref[...], emb_ref[...],
        dimension_numbers=(((1,), (1,)), ((), ())),
        preferred_element_type=jnp.float32)
    scores = scores + lmb_ref[...].astype(jnp.float32)
    out_ref[...] = scores.astype(out_ref.dtype)


def _pick_tile_v(V, target):
    """Largest power-of-two-ish vocab tile (multiple of 128) with small padding."""
    best_c, best_pad = 128, _round_up(V, 128) - V
    c = target
    while c >= 128:
        pad = _round_up(V, c) - V
        if pad <= max(V // 50, 0):      # <=2% wasted logits -> take largest such
            return c
        if pad < best_pad:
            best_c, best_pad = c, pad
        c //= 2
    return best_c


def bert_pretraining_heads(sequence_output, pooled_output,
                           bert_model_embedding_weights, params,
                           task_idx=None):
    """Returns (prediction_scores [B,S,V], seq_relationship_score [B,L] or None)."""
    del task_idx  # unused in the reference forward
    B, S, H = sequence_output.shape
    V = bert_model_embedding_weights.shape[0]
    N = B * S

    x = sequence_output.reshape(N, H)
    emb = bert_model_embedding_weights            # [V, H] -- no transpose copy
    lm_bias = params["lm_bias"]

    def _b(a):
        return jnp.dtype(a.dtype).itemsize

    # --- generation-aware VMEM budget --------------------------------------
    try:
        vmem_cap = int(pltpu.get_tpu_info().vmem_capacity_bytes)
    except Exception:  # pragma: no cover - conservative fallback
        vmem_cap = 64 << 20
    if vmem_cap <= (96 << 20):            # v7x-class: 64 MiB per TensorCore
        vmem_cap_limit = min(int(0.80 * vmem_cap), 54 << 20)
        two_core_hint = True              # 2 TCs/chip -> want >=2 row tiles
        target_v = 2048
    else:                                 # v5e / v6e: 128 MiB physical VMEM
        vmem_cap_limit = min(int(0.85 * vmem_cap), 110 << 20)
        two_core_hint = False
        target_v = 4096
    target_n = 1024

    # --- tile selection ------------------------------------------------------
    # Row rounding is dtype-aware: bf16 packs 2 rows/sublane, int8 packs 4.
    row_mult = 8 * max(1, 4 // _b(x))
    TILE_N = min(target_n, _round_up(N, row_mult))
    TILE_V = _pick_tile_v(V, target_v)

    def _vmem_est(tn, tv):
        return (2 * tn * H * _b(x)                    # x block (double-buffered)
                + 2 * H * H * _b(params["dense_w"])   # dense weight
                + 2 * tv * H * _b(emb)                # embedding tile
                + 2 * tn * tv * _b(sequence_output)   # logits tile
                + 8 * H * _b(params["dense_w"])       # biases / gamma / beta
                + tn * H * _b(emb))                   # h scratch (emb dtype)

    budget = vmem_cap_limit - (4 << 20)
    while _vmem_est(TILE_N, TILE_V) > budget:
        if TILE_V > 512:
            TILE_V = max(512, TILE_V // 2)
        elif TILE_N > 128:
            TILE_N = max(128, TILE_N // 2)
        else:
            break

    # On 2-TC chips make sure the "parallel" row axis has >=2 tiles so the
    # grid actually shards across TensorCores (keep vocab axis "arbitrary":
    # the pl.when(j==0) scratch pattern requires it to stay sequential).
    if two_core_hint and _round_up(N, TILE_N) // TILE_N < 2 and N > row_mult:
        TILE_N = _round_up(_cdiv(N, 2), row_mult)

    N_pad = _round_up(N, TILE_N)
    V_pad = _round_up(V, TILE_V)

    if N_pad != N:
        x = jnp.pad(x, ((0, N_pad - N), (0, 0)))
    if V_pad != V:
        emb = jnp.pad(emb, ((0, V_pad - V), (0, 0)))
        lm_bias = jnp.pad(lm_bias, (0, V_pad - V))

    grid = (N_pad // TILE_N, V_pad // TILE_V)

    vmem_limit = int(min(max(_vmem_est(TILE_N, TILE_V) + (4 << 20), 32 << 20),
                         vmem_cap_limit))

    # Advisory cost estimate so XLA schedules the surrounding (tiny) ops
    # around the long custom call instead of serializing with it.
    cost = pl.CostEstimate(
        flops=int(2 * N_pad * V_pad * H + 2 * N_pad * H * H),
        transcendentals=int(N_pad * H),
        bytes_accessed=int(N_pad * H * _b(x)
                           + grid[0] * V_pad * H * _b(emb)   # emb re-stream
                           + N_pad * V_pad * _b(sequence_output)
                           + H * H * _b(params["dense_w"])),
    )

    scores = pl.pallas_call(
        lm_head_kernel,
        out_shape=jax.ShapeDtypeStruct((N_pad, V_pad), sequence_output.dtype),
        grid=grid,
        in_specs=[
            pl.BlockSpec((TILE_N, H), lambda i, j: (i, 0)),   # x rows
            pl.BlockSpec((H, H), lambda i, j: (0, 0)),        # dense W [out,in]
            pl.BlockSpec((1, H), lambda i, j: (0, 0)),        # dense b
            pl.BlockSpec((1, H), lambda i, j: (0, 0)),        # LN gamma
            pl.BlockSpec((1, H), lambda i, j: (0, 0)),        # LN beta
            pl.BlockSpec((TILE_V, H), lambda i, j: (j, 0)),   # embedding tile
            pl.BlockSpec((1, TILE_V), lambda i, j: (0, j)),   # lm bias tile
        ],
        out_specs=pl.BlockSpec((TILE_N, TILE_V), lambda i, j: (i, j)),
        scratch_shapes=[pltpu.VMEM((TILE_N, H), emb.dtype)],
        compiler_params=pltpu.CompilerParams(
            dimension_semantics=("parallel", "arbitrary"),
            vmem_limit_bytes=vmem_limit),
        cost_estimate=cost,
    )(x, params["dense_w"], params["dense_b"][None, :],
      params["ln_gamma"][None, :], params["ln_beta"][None, :],
      emb, lm_bias[None, :])

    # Avoid the full-copy slice of the logits tensor whenever no padding was
    # needed (tile selection above tries hard to make padding zero/small).
    if N_pad == N and V_pad == V:
        prediction_scores = scores.reshape(B, S, V)
    else:
        # TODO(synk): downstream losses could consume padded logits + a mask to
        # skip this slice copy entirely; kept here to preserve the module API.
        prediction_scores = scores[:N, :V].reshape(B, S, V)

    if pooled_output is None or params.get("sr_w") is None:
        seq_relationship_score = None
    else:
        # Tiny (B,H) @ (H,num_labels) head: plain XLA (lane-sparse output of 2
        # columns; a Pallas kernel would only add launch overhead).
        seq_relationship_score = (
            jax.lax.dot_general(pooled_output, params["sr_w"],
                                dimension_numbers=(((1,), (1,)), ((), ())),
                                preferred_element_type=jnp.float32)
            + params["sr_b"]).astype(pooled_output.dtype)

    return prediction_scores, seq_relationship_score


def _reference(sequence_output, pooled_output, emb_w, params):
    x = sequence_output.astype(jnp.float32)
    h = jnp.einsum("bsh,oh->bso", x, params["dense_w"]) + params["dense_b"]
    h = _gelu_exact(h)
    mu = jnp.mean(h, axis=-1, keepdims=True)
    var = jnp.mean((h - mu) ** 2, axis=-1, keepdims=True)
    h = (h - mu) / jnp.sqrt(var + 1e-5)
    h = h * params["ln_gamma"] + params["ln_beta"]
    scores = jnp.einsum("bsh,vh->bsv", h, emb_w) + params["lm_bias"]
    sr = jnp.dot(pooled_output, params["sr_w"].T) + params["sr_b"]
    return scores, sr


if __name__ == "__main__":
    # Small, module-consistent shapes:
    B, S, H, V, L = 2, 8, 32, 128, 2   # batch, seq, hidden, vocab, num_labels

    key = jax.random.PRNGKey(0)
    ks = jax.random.split(key, 8)

    sequence_output = jax.random.normal(ks[0], (B, S, H), jnp.float32)
    pooled_output = jax.random.normal(ks[1], (B, H), jnp.float32)
    bert_model_embedding_weights = 0.02 * jax.random.normal(ks[2], (V, H), jnp.float32)

    params = {
        # BertPredictionHeadTransform.dense : nn.Linear(H, H), [out, in]
        "dense_w": 0.02 * jax.random.normal(ks[3], (H, H), jnp.float32),
        "dense_b": 0.01 * jax.random.normal(ks[4], (H,), jnp.float32),
        # BertLayerNorm(H)
        "ln_gamma": jnp.ones((H,), jnp.float32),
        "ln_beta": jnp.zeros((H,), jnp.float32),
        # BertLMPredictionHead.bias (decoder bias over vocab)
        "lm_bias": jnp.zeros((V,), jnp.float32),
        # seq_relationship : nn.Linear(H, num_labels), [out, in]
        "sr_w": 0.02 * jax.random.normal(ks[5], (L, H), jnp.float32),
        "sr_b": jnp.zeros((L,), jnp.float32),
    }

    pred_scores, seq_rel = bert_pretraining_heads(
        sequence_output, pooled_output, bert_model_embedding_weights, params,
        task_idx=None)
    jax.block_until_ready((pred_scores, seq_rel))

    assert pred_scores.shape == (B, S, V)
    assert seq_rel.shape == (B, L)

    ref_scores, ref_sr = _reference(sequence_output, pooled_output,
                                    bert_model_embedding_weights, params)
    assert bool(jnp.all(jnp.isfinite(pred_scores)))
    assert bool(jnp.allclose(pred_scores, ref_scores, atol=5e-3, rtol=5e-3))
    assert bool(jnp.allclose(seq_rel, ref_sr, atol=5e-3, rtol=5e-3))
    print("KERNEL_OK")
</pallas_src>

<mosaic_0001>
module attributes {stable_mosaic.version = 11 : i64} {
  func.func @lm_head_kernel(%arg0: i32, %arg1: i32, %arg2: memref<8x32xf32, #tpu.memory_space<vmem>>, %arg3: memref<32x32xf32, #tpu.memory_space<vmem>>, %arg4: memref<1x32xf32, #tpu.memory_space<vmem>>, %arg5: memref<1x32xf32, #tpu.memory_space<vmem>>, %arg6: memref<1x32xf32, #tpu.memory_space<vmem>>, %arg7: memref<128x32xf32, #tpu.memory_space<vmem>>, %arg8: memref<1x128xf32, #tpu.memory_space<vmem>>, %arg9: memref<8x128xf32, #tpu.memory_space<vmem>>, %arg10: memref<8x32xf32, #tpu.memory_space<vmem>>) attributes {dimension_semantics = [#tpu.dimension_semantics<parallel>, #tpu.dimension_semantics<arbitrary>], iteration_bounds = array<i64: 2, 1>, scalar_prefetch = 0 : i64, scratch_operands = 1 : i64, tpu.core_type = #tpu.core_type<tc>, window_params = [{transform_indices = @transform_0, window_bounds = array<i64: 8, 32>}, {pipeline_mode = #tpu.pipeline_mode<synchronous>, transform_indices = @transform_1, window_bounds = array<i64: 32, 32>}, {pipeline_mode = #tpu.pipeline_mode<synchronous>, transform_indices = @transform_2, window_bounds = array<i64: 1, 32>}, {pipeline_mode = #tpu.pipeline_mode<synchronous>, transform_indices = @transform_3, window_bounds = array<i64: 1, 32>}, {pipeline_mode = #tpu.pipeline_mode<synchronous>, transform_indices = @transform_4, window_bounds = array<i64: 1, 32>}, {transform_indices = @transform_5, window_bounds = array<i64: 128, 32>}, {transform_indices = @transform_6, window_bounds = array<i64: 1, 128>}, {transform_indices = @transform_7, window_bounds = array<i64: 8, 128>}]} {
    %c0_i32 = arith.constant 0 : i32
    %0 = arith.cmpi eq, %arg1, %c0_i32 : i32
    %1 = arith.extui %0 : i1 to i32
    %c0_i32_0 = arith.constant 0 : i32
    %2 = arith.cmpi ne, %1, %c0_i32_0 : i32
    scf.if %2 {
      %c0_8 = arith.constant 0 : index
      %c0_9 = arith.constant 0 : index
      %10 = vector.load %arg2[%c0_8, %c0_9] : memref<8x32xf32, #tpu.memory_space<vmem>>, vector<8x32xf32>
      %c0_10 = arith.constant 0 : index
      %c0_11 = arith.constant 0 : index
      %11 = vector.load %arg3[%c0_10, %c0_11] : memref<32x32xf32, #tpu.memory_space<vmem>>, vector<32x32xf32>
      %cst_12 = arith.constant dense<0.000000e+00> : vector<8x32xf32>
      %12 = tpu.matmul %10, %11, %cst_12 {dimension_numbers = #tpu.dot_dimension_numbers<[1], [1], [0], [0], [0, 0, 1, 0], [], []>} : vector<8x32xf32>, vector<32x32xf32>, vector<8x32xf32> -> vector<8x32xf32>
      %c0_13 = arith.constant 0 : index
      %c0_14 = arith.constant 0 : index
      %13 = vector.load %arg4[%c0_13, %c0_14] : memref<1x32xf32, #tpu.memory_space<vmem>>, vector<1x32xf32>
      %14 = vector.broadcast %13 : vector<1x32xf32> to vector<8x32xf32>
      %15 = arith.addf %12, %14 : vector<8x32xf32>
      %cst_15 = arith.constant 5.000000e-01 : f32
      %16 = vector.broadcast %cst_15 : f32 to vector<8x32xf32>
      %17 = arith.mulf %15, %16 : vector<8x32xf32>
      %cst_16 = arith.constant 1.41421354 : f32
      %18 = vector.broadcast %cst_16 : f32 to vector<8x32xf32>
      %19 = arith.divf %15, %18 : vector<8x32xf32>
      %20 = math.erf %19 : vector<8x32xf32>
      %cst_17 = arith.constant 1.000000e+00 : f32
      %21 = vector.broadcast %cst_17 : f32 to vector<8x32xf32>
      %22 = arith.addf %21, %20 : vector<8x32xf32>
      %23 = arith.mulf %17, %22 : vector<8x32xf32>
      %cst_18 = arith.constant dense<0.000000e+00> : vector<8xf32>
      %24 = vector.multi_reduction <add>, %23, %cst_18 [1] : vector<8x32xf32> to vector<8xf32>
      %25 = vector.shape_cast %24 : vector<8xf32> to vector<8x1xf32>
      %cst_19 = arith.constant 3.200000e+01 : f32
      %26 = vector.broadcast %cst_19 : f32 to vector<8x1xf32>
      %27 = arith.divf %25, %26 : vector<8x1xf32>
      %28 = vector.broadcast %27 : vector<8x1xf32> to vector<8x32xf32>
      %29 = arith.subf %23, %28 : vector<8x32xf32>
      %30 = vector.broadcast %27 : vector<8x1xf32> to vector<8x32xf32>
      %31 = arith.subf %23, %30 : vector<8x32xf32>
      %32 = arith.mulf %29, %31 : vector<8x32xf32>
      %cst_20 = arith.constant dense<0.000000e+00> : vector<8xf32>
      %33 = vector.multi_reduction <add>, %32, %cst_20 [1] : vector<8x32xf32> to vector<8xf32>
      %34 = vector.shape_cast %33 : vector<8xf32> to vector<8x1xf32>
      %cst_21 = arith.constant 3.200000e+01 : f32
      %35 = vector.broadcast %cst_21 : f32 to vector<8x1xf32>
      %36 = arith.divf %34, %35 : vector<8x1xf32>
      %37 = vector.broadcast %27 : vector<8x1xf32> to vector<8x32xf32>
      %38 = arith.subf %23, %37 : vector<8x32xf32>
      %cst_22 = arith.constant 9.99999974E-6 : f32
      %39 = vector.broadcast %cst_22 : f32 to vector<8x1xf32>
      %40 = arith.addf %36, %39 : vector<8x1xf32>
      %41 = math.rsqrt %40 : vector<8x1xf32>
      %42 = vector.broadcast %41 : vector<8x1xf32> to vector<8x32xf32>
      %43 = arith.mulf %38, %42 : vector<8x32xf32>
      %c0_23 = arith.constant 0 : index
      %c0_24 = arith.constant 0 : index
      %44 = vector.load %arg5[%c0_23, %c0_24] : memref<1x32xf32, #tpu.memory_space<vmem>>, vector<1x32xf32>
      %45 = vector.broadcast %44 : vector<1x32xf32> to vector<8x32xf32>
      %46 = arith.mulf %43, %45 : vector<8x32xf32>
      %c0_25 = arith.constant 0 : index
      %c0_26 = arith.constant 0 : index
      %47 = vector.load %arg6[%c0_25, %c0_26] : memref<1x32xf32, #tpu.memory_space<vmem>>, vector<1x32xf32>
      %48 = vector.broadcast %47 : vector<1x32xf32> to vector<8x32xf32>
      %49 = arith.addf %46, %48 : vector<8x32xf32>
      %c0_27 = arith.constant 0 : index
      %c0_28 = arith.constant 0 : index
      %50 = vector.load %arg10[%c0_27, %c0_28] : memref<8x32xf32, #tpu.memory_space<vmem>>, vector<8x32xf32>
      tpu.vector_store %arg10[%c0_27, %c0_28], %49 {strides = array<i32>} : memref<8x32xf32, #tpu.memory_space<vmem>>, vector<8x32xf32>,
    } else {
    }
    %c0 = arith.constant 0 : index
    %c0_1 = arith.constant 0 : index
    %3 = vector.load %arg10[%c0, %c0_1] : memref<8x32xf32, #tpu.memory_space<vmem>>, vector<8x32xf32>
    %c0_2 = arith.constant 0 : index
    %c0_3 = arith.constant 0 : index
    %4 = vector.load %arg7[%c0_2, %c0_3] : memref<128x32xf32, #tpu.memory_space<vmem>>, vector<128x32xf32>
    %cst = arith.constant dense<0.000000e+00> : vector<8x128xf32>
    %5 = tpu.matmul %3, %4, %cst {dimension_numbers = #tpu.dot_dimension_numbers<[1], [1], [0], [0], [0, 0, 1, 0], [], []>} : vector<8x32xf32>, vector<128x32xf32>, vector<8x128xf32> -> vector<8x128xf32>
    %c0_4 = arith.constant 0 : index
    %c0_5 = arith.constant 0 : index
    %6 = vector.load %arg8[%c0_4, %c0_5] : memref<1x128xf32, #tpu.memory_space<vmem>>, vector<1x128xf32>
    %7 = vector.broadcast %6 : vector<1x128xf32> to vector<8x128xf32>
    %8 = arith.addf %5, %7 : vector<8x128xf32>
    %c0_6 = arith.constant 0 : index
    %c0_7 = arith.constant 0 : index
    %9 = vector.load %arg9[%c0_6, %c0_7] : memref<8x128xf32, #tpu.memory_space<vmem>>, vector<8x128xf32>
    tpu.vector_store %arg9[%c0_6, %c0_7], %8 {strides = array<i32>} : memref<8x128xf32, #tpu.memory_space<vmem>>, vector<8x128xf32>,
    return
  }
  func.func @transform_0(%arg0: i32, %arg1: i32) -> (i32, i32) {
    %c0_i32 = arith.constant 0 : i32
    %c0_i32_0 = arith.constant 0 : i32
    return %arg0, %c0_i32 : i32, i32
  }
  func.func @transform_1(%arg0: i32, %arg1: i32) -> (i32, i32) {
    %c0_i32 = arith.constant 0 : i32
    %c0_i32_0 = arith.constant 0 : i32
    %c0_i32_1 = arith.constant 0 : i32
    return %c0_i32, %c0_i32_0 : i32, i32
  }
  func.func @transform_2(%arg0: i32, %arg1: i32) -> (i32, i32) {
    %c0_i32 = arith.constant 0 : i32
    %c0_i32_0 = arith.constant 0 : i32
    %c0_i32_1 = arith.constant 0 : i32
    return %c0_i32, %c0_i32_0 : i32, i32
  }
  func.func @transform_3(%arg0: i32, %arg1: i32) -> (i32, i32) {
    %c0_i32 = arith.constant 0 : i32
    %c0_i32_0 = arith.constant 0 : i32
    %c0_i32_1 = arith.constant 0 : i32
    return %c0_i32, %c0_i32_0 : i32, i32
  }
  func.func @transform_4(%arg0: i32, %arg1: i32) -> (i32, i32) {
    %c0_i32 = arith.constant 0 : i32
    %c0_i32_0 = arith.constant 0 : i32
    %c0_i32_1 = arith.constant 0 : i32
    return %c0_i32, %c0_i32_0 : i32, i32
  }
  func.func @transform_5(%arg0: i32, %arg1: i32) -> (i32, i32) {
    %c0_i32 = arith.constant 0 : i32
    %c0_i32_0 = arith.constant 0 : i32
    return %arg1, %c0_i32 : i32, i32
  }
  func.func @transform_6(%arg0: i32, %arg1: i32) -> (i32, i32) {
    %c0_i32 = arith.constant 0 : i32
    %c0_i32_0 = arith.constant 0 : i32
    return %c0_i32, %arg1 : i32, i32
  }
  func.func @transform_7(%arg0: i32, %arg1: i32) -> (i32, i32) {
    %c0_i32 = arith.constant 0 : i32
    return %arg0, %arg1 : i32, i32
  }
}

</mosaic_0001>

<bundles_post_ra>
// kernel: tpu_custom_call.1
= control target key start
LH: loop header
LB: loop body
LE: loop exit
PB: predicated region body
PF: predicated region fallthrough
CT: control target
= control target key end

     0   :  { %12 = vsyncpa [#allocation4], 0  ;;  %s1091_s0 = inlined_call_operand.vmem [shape: f32[16,32], index: 0, kind: input, shape index: {}]   ;;  %s1092_s1 = inlined_call_operand.vmem [shape: f32[32,32], index: 1, kind: input, shape index: {}]   ;;  %s1093_s2 = inlined_call_operand.vmem [shape: f32[1,32], index: 2, kind: input, shape index: {}]   ;;  %s1094_s3 = inlined_call_operand.vmem [shape: f32[1,32], index: 3, kind: input, shape index: {}]   ;;  %s1095_s4 = inlined_call_operand.vmem [shape: f32[1,32], index: 4, kind: input, shape index: {}]   ;;  %s1096_s5 = inlined_call_operand.vmem [shape: f32[128,32], index: 5, kind: input, shape index: {}]   ;;  %s1097_s6 = inlined_call_operand.vmem [shape: f32[1,128], index: 6, kind: input, shape index: {}]   ;;  %s1098_s7 = inlined_call_operand.hbm [shape: f32[16,128], index: 7, kind: output, shape index: {}]  }
   0x1   :  { %14 = vsyncpa [#allocation4 + $0x1], 0  ;;  %s897_s24 = smov 0   ;;  %s899_s25 = smov 0  }
   0x2   :  { %s901_s26 = smov 0   ;;  %s903_s27 = smov 0  }
   0x3   :  { %s905_s28 = smov 0   ;;  %s907_s29 = smov 0  }
   0x4 LB: > { %s670_s30 = sadd.s32 4294967295, %s853_s29   ;;  %s671_s8 = sadd.s32 4294967294, %s853_s29   ;;  %s853_s29 = sphi %s907_s29, %s20_s29   ;;  %s849_s28 = sphi %s905_s28, %s1105_s28   ;;  %s845_s27 = sphi %s903_s27, %s1104_s27   ;;  %s841_s26 = sphi %s901_s26, %s1103_s26   ;;  %s837_s25 = sphi %s899_s25, %s1102_s25   ;;  %s833_s24 = sphi %s897_s24, %s1101_s24  }
   0x5   : > { %s32_s9 = sadd.s32 1, %s849_s28  ;;  %s203_s10 = sadd.s32 1, %s841_s26 }
   0x6   : > { %p34_p0 = scmp.ge.s32.totalorder %s32_s9, 2  ;;  %p213_p1 = scmp.ne.s32.totalorder %s841_s26, %s837_s25 }
   0x7   : > { %p214_p2 = scmp.eq.s32.totalorder %s670_s30, 1  ;;  %p219_p3 = scmp.ne.s32.totalorder %s837_s25, %s833_s24 }
   0x8   : > { %s1107_s9 = smov (%p34_p0, %s32_s9), 0  ;;  %p220_p5 = scmp.eq.s32.totalorder %s671_s8, 1 }
   0x9   : > { %p937_p4 = por %p214_p2, %p213_p1  ;;  %s198_s12 = ssub.s32 %s849_s28, %s1107_s9 }
   0xa   : > { %p676_p6 = scmp.ge.s32.totalorder %s853_s29, 1  ;;  %p201_p7 = scmp.eq.s32.totalorder %s198_s12, 0 }
   0xb   : > { %p944_p8 = por %p220_p5, %p219_p3  ;;  %p272_p9 = scmp.lt.s32.totalorder %s853_s29, 3 }
   0xc   : > { %s950_s14 = scalar_select %p201_p7, %s841_s26, %s203_s10  }
   0xd   : > { %p273_p10 = pnand %p676_p6, %p272_p9 }
   0xe   : > { %p311_p11 = scmp.lt.s32.totalorder (!%p273_p10), %s845_s27, 1  ;;  %s703_s16 = sshll.u32 (!%p273_p10), %s845_s27, 3 }
   0xf   : > { %276 = sbr.rel (%p273_p10) target bundleno = 622 (0x26e), region = 48  ;;  %s795_s18 = scalar_lea.hbm (!%p273_p10), %s1098_s7, 16 }
  0x14   : > { %v332_v0 = vld [vmem:[%s1092_s1 + $0x18] sm:$0xff]  ;;  %vm337_vm0 = vcmask 261120   ;;  %v331_v1 = vld [vmem:[%s1092_s1 + $0x10] sm:$0xff]  ;;  %s312_s19 = scalar_select %p311_p11, %s845_s27, 1  ;;  %v330_v2 = vld [vmem:[%s1092_s1 + $0x8] sm:$0xff]  ;;  %v856_v55 = vmov 32.0  }
  0x15   : > { %679 = vmatpush.xpose.msk.msra.mxu0 %vm337_vm0, %v332_v0  ;;  %v329_v3 = vld [vmem:[%s1092_s1] sm:$0xff]  ;;  %v855_v5 = vmov 1.4142135   ;;  %v480_v56 = vld [vmem:[%s1096_s5 + $0x78] sm:$0xff]  ;;  %v479_v57 = vld [vmem:[%s1096_s5 + $0x70] sm:$0xff] }
  0x16   : > { %s678_s22 = sshll.u32 %s312_s19, 3  ;;  %767 = vrcp.f32 %v855_v5  ;;  %v763_v11 = vld [vmem:[%s1093_s2] ss:$0 sm:$0xff]  ;;  %685 = vmatpush.xpose.msk.msra.mxu1 %vm337_vm0, %v480_v56  ;;  %v478_v60 = vld [vmem:[%s1096_s5 + $0x68] sm:$0xff]  ;;  %v476_v0 = vld [vmem:[%s1096_s5 + $0x58] sm:$0xff]  ;;  %s570_s19 = scalar_lea.hbm %s1098_s7, %s703_s16 }
  0x17   : > { %s314_s12 = scalar_lea.vmem %s1091_s0, %s678_s22  ;;  %v477_v62 = vld [vmem:[%s1096_s5 + $0x60] sm:$0xff]  ;;  %s574_s30 = sshll.u32 %s570_s19, 4  ;;  %s575_s30 = int_to_ptr.hbm [resolvable:$true] %s574_s30 }
  0x18   : > { %v328_v4 = vld [vmem:[%s314_s12] sm:$0xff]  ;;  %s308_s12 = sand.u32 1, %s837_s25   ;;  %s789_s10 = sshra.s32 %s575_s30, 4  ;;  %s790_s10 = int_to_ptr.hbm [resolvable:$true] %s789_s10 }
  0x19   : > { %680 = vmatpush.xpose.msk.msra.mxu0 %vm337_vm0, %v331_v1  ;;  %s677_s15 = sshll.u32 %s308_s12, 3  ;;  %s559_s8 = scalar_lea.sflag [#allocation4], %s308_s12 }
  0x1a   : > { %686 = vmatpush.xpose.msk.msra.mxu1 %vm337_vm0, %v479_v57  ;;  %s310_s22 = scalar_lea.vmem [#allocation3], %s677_s15  ;;  %s791_s27 = scalar_lea.hbm %s790_s10, 8 }
  0x1b   : > { %s572_s23 = sshll.u32 %s310_s22, 4  ;;  %p792_p12 = scmp.ne.s32.totalorder %s790_s10, %s791_s27  ;;  %s573_s23 = int_to_ptr.vmem [resolvable:$true] %s572_s23 }
  0x1c   : > { %v768_v6 = vpop.eup %767  ;;  %p796_p1 = scmp.lt.s32.totalorder %s790_s10, %s1098_s7  ;;  %p797_p2 = scmp.lt.s32.totalorder %s795_s18, %s791_s27 }
  0x1d   : > { %681 = vmatpush.xpose.msk.msra.mxu0 %vm337_vm0, %v330_v2  ;;  %v375_v7 = vmul.f32 1.4142135, %v768_v6  ;;  %vm379_vm1 = vweird.f32 %v768_v6  ;;  %v475_v2 = vld [vmem:[%s1096_s5 + $0x50] sm:$0xff]  ;;  %p793_p13 = pnand %p792_p12, %p937_p4 }
  0x1e   : > { %687 = vmatpush.xpose.msk.msra.mxu1 %vm337_vm0, %v478_v60  ;;  %p798_p3 = por %p797_p2, %p796_p1 }
  0x1f   : > { %v376_v8 = vsub.f32 1.0, %v375_v7  ;;  %p794_p0 = pneg %p793_p13 }
  0x21   : > { %682 = vmatpush.xpose.msk.msra.mxu0 %vm337_vm0, %v329_v3  ;;  %v377_v9 = vmul.f32 %v768_v6, %v376_v8  ;;  %p799_p5 = pnand %p798_p3, %p794_p0 }
  0x22   : > { %688 = vmatpush.xpose.msk.msra.mxu1 %vm337_vm0, %v477_v62 }
  0x23   : > { %v378_v10 = vadd.f32 %v768_v6, %v377_v9 }
  0x24   : > { %683 = vmatmul.msk.f32.vlgmr.msra.gmra.mxu0 %vm337_vm0, %v328_v4  ;;  %v474_v4 = vld [vmem:[%s1096_s5 + $0x48] sm:$0xff] }
  0x25   : > { %v380_v13 = vsel %vm379_vm1, %v768_v6, %v378_v10  ;;  %v473_v10 = vld [vmem:[%s1096_s5 + $0x40] sm:$0xff] }
  0x26   : > { %689 = vmatpush.xpose.msk.msra.mxu1 %vm337_vm0, %v476_v0 }
  0x2a   : > { %690 = vmatpush.xpose.msk.msra.mxu1 %vm337_vm0, %v475_v2 }
  0x2e   : > { %691 = vmatpush.xpose.msk.msra.mxu1 %vm337_vm0, %v474_v4 }
  0x32   : > { %692 = vmatpush.xpose.msk.msra.mxu1 %vm337_vm0, %v473_v10 }
  0xa1   : > { %v370_v12 = vpop.f32.mrf.mxu0 }
  0xa2   : > { %v371_v14 = vadd.f32 %v763_v11, %v370_v12  ;;  %v472_v11 = vld [vmem:[%s1096_s5 + $0x38] sm:$0xff]  ;;  %v471_v12 = vld [vmem:[%s1096_s5 + $0x30] sm:$0xff] }
  0xa3   : > { %693 = vmatpush.xpose.msk.msra.mxu1 %vm337_vm0, %v472_v11 }
  0xa4   : > { %v381_v15 = vmul.f32 %v380_v13, %v371_v14  ;;  %v373_v51 = vmul.f32 0.5, %v371_v14  ;;  %v470_v13 = vld [vmem:[%s1096_s5 + $0x28] sm:$0xff]  ;;  %v469_v14 = vld [vmem:[%s1096_s5 + $0x20] sm:$0xff] }
  0xa6   : > { %v382_v16 = vmul.f32 %v381_v15, %v381_v15 }
  0xa7   : > { %694 = vmatpush.xpose.msk.msra.mxu1 %vm337_vm0, %v471_v12 }
  0xa8   : > { %v383_v17 = vmin.f32 %v382_v16, 16.0  ;;  %v467_v16 = vld [vmem:[%s1096_s5 + $0x10] sm:$0xff] }
  0xaa   : > { %v384_v18 = vmul.f32 2.1237322e-06, %v383_v17  ;;  %v395_v19 = vmul.f32 3.8918573e-05, %v383_v17 }
  0xab   : > { %695 = vmatpush.xpose.msk.msra.mxu1 %vm337_vm0, %v470_v13 }
  0xac   : > { %v385_v20 = vadd.f32 0.00028619796, %v384_v18  ;;  %v396_v21 = vadd.f32 0.001143296, %v395_v19  ;;  %v465_v19 = vld [vmem:[%s1096_s5] sm:$0xff] }
  0xae   : > { %v386_v22 = vmul.f32 %v385_v20, %v383_v17  ;;  %v397_v23 = vmul.f32 %v396_v21, %v383_v17 }
  0xaf   : > { %696 = vmatpush.xpose.msk.msra.mxu1 %vm337_vm0, %v469_v14 }
  0xb0   : > { %v398_v24 = vadd.f32 0.014752088, %v397_v23  ;;  %v387_v25 = vadd.f32 0.0036580483, %v386_v22 }
  0xb2   : > { %v399_v26 = vmul.f32 %v398_v24, %v383_v17  ;;  %v388_v28 = vmul.f32 %v387_v25, %v383_v17 }
  0xb4   : > { %v400_v27 = vadd.f32 0.112945676, %v399_v26  ;;  %v389_v31 = vadd.f32 0.05243302, %v388_v28  ;;  %v764_v28 = vld [vmem:[%s1094_s3] ss:$0 sm:$0xff] }
  0xb6   : > { %v401_v29 = vmul.f32 %v400_v27, %v383_v17  ;;  %v390_v34 = vmul.f32 %v389_v31, %v383_v17 }
  0xb8   : > { %v402_v30 = vadd.f32 0.4994258, %v401_v29  ;;  %v391_v35 = vadd.f32 0.18741608, %v390_v34 }
  0xba   : > { %v403_v32 = vmul.f32 %v402_v30, %v383_v17  ;;  %v392_v37 = vmul.f32 %v391_v35, %v383_v17  ;;  %v466_v17 = vld [vmem:[%s1096_s5 + $0x8] sm:$0xff]  ;;  %v765_v30 = vld [vmem:[%s1095_s4] ss:$0 sm:$0xff] }
  0xbb   : > { %v766_v35 = vld [vmem:[%s1097_s6] ss:$0 sm:$0xff] }
  0xbc   : > { %v404_v33 = vadd.f32 1.0, %v403_v32  ;;  %v393_v41 = vadd.f32 1.1283791, %v392_v37 }
  0xbe   : > { %769 = vrcp.f32 %v404_v33  ;;  %v416_v40 = vand.u32 2147483648, %v404_v33  ;;  %v414_v43 = vand.u32 2147483647, %v404_v33  ;;  %vm410_vm3 = vweird.f32 %v404_v33 }
  0xbf   : > { %v394_v46 = vmul.f32 %v393_v41, %v381_v15  ;;  %771 = vrcp.f32 %v856_v55  ;;  %v468_v15 = vld [vmem:[%s1096_s5 + $0x18] sm:$0xff] }
  0xc0   : > { %v417_v45 = vor.u32 1.1754944e-38, %v416_v40  ;;  %vm415_vm5 = vcmp.eq.f32.partialorder %v414_v43, 8.507059e+37  ;;  %697 = vmatpush.xpose.msk.msra.mxu1 %vm337_vm0, %v468_v15 }
  0xc4   : > { %v770_v36 = vpop.eup %769  ;;  %698 = vmatpush.xpose.msk.msra.mxu1 %vm337_vm0, %v467_v16 }
  0xc5   : > { %v406_v38 = vmul.f32 %v770_v36, %v404_v33  ;;  %vm411_vm2 = vweird.f32 %v770_v36  ;;  %v772_v58 = vpop.eup %771 }
  0xc6   : > { %vm412_vm4 = vmor %vm410_vm3, %vm411_vm2  ;;  %v428_v59 = vmul.f32 32.0, %v772_v58  ;;  %vm432_vm6 = vweird.f32 %v772_v58 }
  0xc7   : > { %v407_v39 = vsub.f32 1.0, %v406_v38 }
  0xc8   : > { %v429_v61 = vsub.f32 1.0, %v428_v59  ;;  %699 = vmatpush.xpose.msk.msra.mxu1 %vm337_vm0, %v466_v17 }
  0xc9   : > { %v408_v42 = vmul.f32 %v770_v36, %v407_v39 }
  0xca   : > { %v430_v63 = vmul.f32 %v772_v58, %v429_v61 }
  0xcb   : > { %v409_v44 = vadd.f32 %v770_v36, %v408_v42 }
  0xcc   : > { %v431_v1 = vadd.f32 %v772_v58, %v430_v63  ;;  %700 = vmatpush.xpose.msk.msra.mxu1 %vm337_vm0, %v465_v19 }
  0xcd   : > { %v413_v47 = vsel %vm412_vm4, %v770_v36, %v409_v44 }
  0xce   : > { %v418_v48 = vsel %vm415_vm5, %v417_v45, %v413_v47  ;;  %v433_v3 = vsel %vm432_vm6, %v772_v58, %v431_v1 }
  0xcf   : > { %v419_v49 = vmul.f32 %v418_v48, %v394_v46 }
  0xd1   : > { %v684_v50 = vclamps-f32 %v419_v49, 1.0 }
  0xd3   : > { %v422_v52 = vadd.f32 1.0, %v684_v50 }
  0xd5   : > { %v423_v53 = vmul.f32 %v422_v52, %v373_v51 }
  0xd7   : > { %v424_v54 = vsel %vm337_vm0, %v423_v53, 0.0 }
  0xd8   : > { %425 = vadd.xlane.f32.xlu0 %v424_v54 }
 0x14b   : > { %v426_v5 = vpop.xlane.xlu0 %425 }
 0x14c   : > { %v434_v6 = vmul.f32 %v433_v3, %v426_v5 }
 0x14e   : > { %v435_v7 = vsub.f32 %v423_v53, %v434_v6 }
 0x150   : > { %v436_v8 = vmul.f32 %v435_v7, %v435_v7 }
 0x152   : > { %v437_v9 = vsel %vm337_vm0, %v436_v8, 0.0 }
 0x153   : > { %438 = vadd.xlane.f32.xlu0 %v437_v9 }
 0x1c6   : > { %v439_v18 = vpop.xlane.xlu0 %438 }
 0x1c7   : > { %v440_v20 = vmul.f32 %v439_v18, %v433_v3 }
 0x1c9   : > { %v441_v21 = vadd.f32 1e-05, %v440_v20 }
 0x1cb   : > { %773 = vrsqrt.f32 %v441_v21  ;;  %vm448_vm8 = vweird.f32 %v441_v21 }
 0x1d1   : > { %v774_v22 = vpop.eup %773 }
 0x1d2   : > { %v443_v23 = vmul.f32 %v774_v22, %v441_v21  ;;  %vm449_vm7 = vweird.f32 %v774_v22 }
 0x1d3   : > { %vm450_vm9 = vmor %vm448_vm8, %vm449_vm7 }
 0x1d4   : > { %v444_v24 = vmul.f32 %v774_v22, %v443_v23 }
 0x1d6   : > { %v445_v25 = vmul.f32 0.5, %v444_v24 }
 0x1d8   : > { %v446_v26 = vsub.f32 1.5, %v445_v25 }
 0x1da   : > { %v447_v27 = vmul.f32 %v774_v22, %v446_v26 }
 0x1dc   : > { %v451_v29 = vsel %vm450_vm9, %v774_v22, %v447_v27 }
 0x1dd   : > { %v452_v31 = vmul.f32 %v451_v29, %v435_v7 }
 0x1df   : > { %v457_v32 = vmul.f32 %v764_v28, %v452_v31 }
 0x1e1   : > { %v462_v33 = vadd.f32 %v765_v30, %v457_v32 }
 0x1e3   : > { %463 = vst.msk [vmem:[#allocation2] sm:$0xff] %vm337_vm0, %v462_v33 }
 0x1ea   : > { %v464_v34 = vld [vmem:[#allocation2] sm:$0xff] }
 0x1eb   : > { %701 = vmatmul.msk.f32.vlgmr.msra.gmra.mxu1 %vm337_vm0, %v464_v34 }
 0x268   : > { %v554_v36 = vpop.f32.mrf.mxu1 }
 0x269   : > { %v555_v37 = vadd.f32 %v766_v35, %v554_v36 }
 0x26b   : > { %557 = vst [vmem:[%s310_s22] sm:$0xff] %v555_v37 }
 0x26c   : > { %802 = shalt.err (!%p799_p5)
}
 0x26d   : > { %706 = dma.vmem_to_hbm [thread:$0]  (%p937_p4), %s573_s23, 128, %s575_s30, %s559_s8  }
 0x26e PF: > { %p712_p6 = scmp.ge.s32.totalorder %s853_s29, 2  ;;  %s586_s12 = sand.u32 1, %s833_s24  }
 0x26f   : > { %s587_s19 = scalar_lea.sflag [#allocation4], %s586_s12 }
 0x270   : > { %p709_p7 = pnand %p712_p6, %p944_p8 }
 0x272   : > { %p710_p9 = pneg %p709_p7 }
 0x274   : > { %828 = dma.done.wait (%p710_p9), %s587_s19, 128  }
 0x275   : > { %830 = vsyncadd (%p710_p9), %s587_s19, 4294967168  ;;  %s20_s29 = sadd.s32 1, %s853_s29   ;;  %s1101_s24 = smov %s837_s25 }
 0x276   : > { %p17_p10 = scmp.ge.s32.totalorder %s20_s29, 4   ;;  %s1102_s25 = smov %s841_s26 }
 0x277   : > { %s1103_s26 = smov %s950_s14  ;;  %s1104_s27 = smov %s849_s28 }
 0x278   : > { %s1105_s28 = smov %s1107_s9  ;;  %19 = sbr.rel (!%p17_p10) target bundleno = 4 (0x4), region = 93 }
 0x27d   :  { %593 = vsyncpa [#allocation4], 1 }
 0x27e   :  { %595 = vsyncpa [#allocation4 + $0x1], 1 }

</bundles_post_ra>
